<compile_context>
chip_gen: v7x
topology: tpu7x:2x2x1
jax: 0.10.0
libtpu: 0.0.40
codegen_flags: <defaults>
</compile_context>

<pallas_src>
import jax
import jax.numpy as jnp
from jax.experimental import pallas as pl
from jax.experimental.pallas import tpu as pltpu

H1 = 128
H2 = 64
OUT_PAD = 128            # classes padded to a full 128-lane vreg width
NEG = -1e30              # f32 bias for padded class columns -> exp() == 0


def mlp_kernel(x_ref, w1_ref, b1_ref, w2_ref, b2_ref, w3_ref, b3_ref, o_ref):
    # x arrives f32 from HBM; cast to bf16 on the VPU (MXU inputs are bf16).
    x = x_ref[...].astype(jnp.bfloat16)
    # fc1 + relu  (f32 MXU accumulation, bf16 epilogue)
    h1 = jnp.dot(x, w1_ref[...], preferred_element_type=jnp.float32)
    h1 = jnp.maximum(h1.astype(jnp.bfloat16) + b1_ref[...], 0.0)
    # fc2 + relu
    h2 = jnp.dot(h1, w2_ref[...], preferred_element_type=jnp.float32)
    h2 = jnp.maximum(h2.astype(jnp.bfloat16) + b2_ref[...], 0.0)
    # fc3 (class dim padded to 128; padded columns carry f32 bias = NEG)
    logits = jnp.dot(h2, w3_ref[...], preferred_element_type=jnp.float32) + b3_ref[...]
    # log_softmax over the class axis in f32 (padded columns contribute
    # exp(.) = 0, so the reduction equals the one over the logical classes).
    m = jnp.max(logits, axis=-1, keepdims=True)
    shifted = logits - m
    lse = jnp.log(jnp.sum(jnp.exp(shifted), axis=-1, keepdims=True))
    o_ref[...] = (shifted - lse).astype(o_ref.dtype)


def _round16(n):
    return ((int(n) + 15) // 16) * 16


def net_forward(x, params, *, tile_b=512):
    """x: (B, n_features) f32.  Returns (B, out_dim) f32 log-probabilities."""
    w1, b1, w2, b2, w3, b3 = (params["w1"], params["b1"], params["w2"],
                              params["b2"], params["w3"], params["b3"])
    out_dim = params["out_dim"]
    B, F = x.shape

    # Batch tile: multiple of 16 (bf16 sublane packing).  Cap it so the grid
    # has >= 2 steps where possible (v7x shards "parallel" steps across its
    # two TensorCores); neutral on v5e/v6e.
    tile_b = _round16(max(16, min(int(tile_b), 1024)))
    if B > 16:
        tile_b = min(tile_b, _round16(pl.cdiv(B, 2)))
    grid = (pl.cdiv(B, tile_b),)

    def resident(shape):
        # Same block index every grid step -> parameter stays VMEM-resident.
        return pl.BlockSpec(shape, lambda i: (0, 0))

    flops = 2 * B * (F * H1 + H1 * H2 + H2 * OUT_PAD)
    bytes_accessed = (
        B * F * 4                                        # x (f32 in)
        + (w1.size + w2.size + w3.size) * 2              # weights (bf16)
        + (b1.size + b2.size) * 2 + b3.size * 4          # biases
        + B * OUT_PAD * 2                                # output (bf16)
    )

    y = pl.pallas_call(
        mlp_kernel,
        out_shape=jax.ShapeDtypeStruct((B, OUT_PAD), jnp.bfloat16),
        grid=grid,
        in_specs=[
            pl.BlockSpec((tile_b, F), lambda i: (i, 0)),
            resident(w1.shape), resident(b1.shape),
            resident(w2.shape), resident(b2.shape),
            resident(w3.shape), resident(b3.shape),
        ],
        out_specs=pl.BlockSpec((tile_b, OUT_PAD), lambda i: (i, 0)),
        compiler_params=pltpu.CompilerParams(
            dimension_semantics=("parallel",)),
        cost_estimate=pl.CostEstimate(
            flops=flops,
            transcendentals=B * OUT_PAD,
            bytes_accessed=bytes_accessed),
    )(x, w1, b1, w2, b2, w3, b3)

    # Drop padded class columns; upcast the bf16 log-probs back to f32.
    return y[:, :out_dim].astype(jnp.float32)


def init_params(key, n_features, out):
    """nn.Linear-shaped params, stored transposed (in, out)."""
    ks = jax.random.split(key, 6)

    def lin(kw, kb, fan_in, fan_out):
        bound = 1.0 / jnp.sqrt(fan_in)
        w = jax.random.uniform(kw, (fan_in, fan_out), jnp.float32, -bound, bound)
        b = jax.random.uniform(kb, (1, fan_out), jnp.float32, -bound, bound)
        return w, b

    w1, b1 = lin(ks[0], ks[1], n_features, H1)
    w2, b2 = lin(ks[2], ks[3], H1, H2)
    w3, b3 = lin(ks[4], ks[5], H2, out)
    # Pad the class dimension to a full 128-lane width: zero weight columns,
    # NEG bias (f32) so log_softmax over 128 columns equals log_softmax over
    # the `out` logical columns.
    w3p = jnp.zeros((H2, OUT_PAD), jnp.float32).at[:, :out].set(w3)
    b3p = jnp.full((1, OUT_PAD), NEG, jnp.float32).at[:, :out].set(b3)
    return {
        "w1": w1.astype(jnp.bfloat16), "b1": b1.astype(jnp.bfloat16),
        "w2": w2.astype(jnp.bfloat16), "b2": b2.astype(jnp.bfloat16),
        "w3": w3p.astype(jnp.bfloat16), "b3": b3p,          # b3 stays f32
        "out_dim": out,
    }


def ref_forward(x, params):
    """Pure-JAX reference mirroring the kernel's bf16-in / f32-accumulate math."""
    f32 = lambda a: a.astype(jnp.float32)
    out = params["out_dim"]
    xb = x.astype(jnp.bfloat16)
    h1 = f32(xb) @ f32(params["w1"])
    h1 = jnp.maximum(h1.astype(jnp.bfloat16) + params["b1"], 0.0)
    h2 = f32(h1) @ f32(params["w2"])
    h2 = jnp.maximum(h2.astype(jnp.bfloat16) + params["b2"], 0.0)
    logits = f32(h2) @ f32(params["w3"])[:, :out] + params["b3"][:, :out]
    return jax.nn.log_softmax(logits, axis=1)


if __name__ == "__main__":
    n_features = 32
    out_classes = 10
    batch = 200          # deliberately NOT a multiple of the batch tile

    key = jax.random.PRNGKey(0)
    kx, kp = jax.random.split(key)
    x = jax.random.normal(kx, (batch, n_features), jnp.float32)
    params = init_params(kp, n_features, out_classes)

    y = jax.block_until_ready(net_forward(x, params, tile_b=128))

    ref = ref_forward(x, params)
    assert y.shape == (batch, out_classes)
    err = float(jnp.max(jnp.abs(y - ref)))
    # bf16 output storage carries ~8 mantissa bits; 2e-2 is comfortably within
    # that for log-probabilities while still catching real bugs.
    assert bool(jnp.allclose(y, ref, atol=2e-2, rtol=2e-2)), f"max abs err {err}"

    print("KERNEL_OK")
</pallas_src>

<mosaic_0001>
module attributes {stable_mosaic.version = 11 : i64} {
  func.func @mlp_kernel(%arg0: i32, %arg1: memref<112x32xf32, #tpu.memory_space<vmem>>, %arg2: memref<32x128xbf16, #tpu.memory_space<vmem>>, %arg3: memref<1x128xbf16, #tpu.memory_space<vmem>>, %arg4: memref<128x64xbf16, #tpu.memory_space<vmem>>, %arg5: memref<1x64xbf16, #tpu.memory_space<vmem>>, %arg6: memref<64x128xbf16, #tpu.memory_space<vmem>>, %arg7: memref<1x128xf32, #tpu.memory_space<vmem>>, %arg8: memref<112x128xbf16, #tpu.memory_space<vmem>>) attributes {dimension_semantics = [#tpu.dimension_semantics<parallel>], iteration_bounds = array<i64: 2>, scalar_prefetch = 0 : i64, scratch_operands = 0 : i64, tpu.core_type = #tpu.core_type<tc>, window_params = [{transform_indices = @transform_0, window_bounds = array<i64: 112, 32>}, {pipeline_mode = #tpu.pipeline_mode<synchronous>, transform_indices = @transform_1, window_bounds = array<i64: 32, 128>}, {pipeline_mode = #tpu.pipeline_mode<synchronous>, transform_indices = @transform_2, window_bounds = array<i64: 1, 128>}, {pipeline_mode = #tpu.pipeline_mode<synchronous>, transform_indices = @transform_3, window_bounds = array<i64: 128, 64>}, {pipeline_mode = #tpu.pipeline_mode<synchronous>, transform_indices = @transform_4, window_bounds = array<i64: 1, 64>}, {pipeline_mode = #tpu.pipeline_mode<synchronous>, transform_indices = @transform_5, window_bounds = array<i64: 64, 128>}, {pipeline_mode = #tpu.pipeline_mode<synchronous>, transform_indices = @transform_6, window_bounds = array<i64: 1, 128>}, {transform_indices = @transform_7, window_bounds = array<i64: 112, 128>}]} {
    %c0 = arith.constant 0 : index
    %c0_0 = arith.constant 0 : index
    %0 = vector.load %arg1[%c0, %c0_0] : memref<112x32xf32, #tpu.memory_space<vmem>>, vector<112x32xf32>
    %1 = arith.truncf %0 : vector<112x32xf32> to vector<112x32xbf16>
    %c0_1 = arith.constant 0 : index
    %c0_2 = arith.constant 0 : index
    %2 = vector.load %arg2[%c0_1, %c0_2] : memref<32x128xbf16, #tpu.memory_space<vmem>>, vector<32x128xbf16>
    %cst = arith.constant dense<0.000000e+00> : vector<112x128xf32>
    %3 = tpu.matmul %1, %2, %cst {dimension_numbers = #tpu.dot_dimension_numbers<[1], [0], [0], [1], [0, 0, 1, 1], [], []>} : vector<112x32xbf16>, vector<32x128xbf16>, vector<112x128xf32> -> vector<112x128xf32>
    %4 = arith.truncf %3 : vector<112x128xf32> to vector<112x128xbf16>
    %c0_3 = arith.constant 0 : index
    %c0_4 = arith.constant 0 : index
    %5 = vector.load %arg3[%c0_3, %c0_4] : memref<1x128xbf16, #tpu.memory_space<vmem>>, vector<1x128xbf16>
    %6 = vector.broadcast %5 : vector<1x128xbf16> to vector<112x128xbf16>
    %7 = arith.addf %4, %6 : vector<112x128xbf16>
    %cst_5 = arith.constant 0.000000e+00 : bf16
    %8 = vector.broadcast %cst_5 : bf16 to vector<112x128xbf16>
    %9 = arith.maximumf %7, %8 : vector<112x128xbf16>
    %c0_6 = arith.constant 0 : index
    %c0_7 = arith.constant 0 : index
    %10 = vector.load %arg4[%c0_6, %c0_7] : memref<128x64xbf16, #tpu.memory_space<vmem>>, vector<128x64xbf16>
    %cst_8 = arith.constant dense<0.000000e+00> : vector<112x64xf32>
    %11 = tpu.matmul %9, %10, %cst_8 {dimension_numbers = #tpu.dot_dimension_numbers<[1], [0], [0], [1], [0, 0, 1, 1], [], []>} : vector<112x128xbf16>, vector<128x64xbf16>, vector<112x64xf32> -> vector<112x64xf32>
    %12 = arith.truncf %11 : vector<112x64xf32> to vector<112x64xbf16>
    %c0_9 = arith.constant 0 : index
    %c0_10 = arith.constant 0 : index
    %13 = vector.load %arg5[%c0_9, %c0_10] : memref<1x64xbf16, #tpu.memory_space<vmem>>, vector<1x64xbf16>
    %14 = vector.broadcast %13 : vector<1x64xbf16> to vector<112x64xbf16>
    %15 = arith.addf %12, %14 : vector<112x64xbf16>
    %cst_11 = arith.constant 0.000000e+00 : bf16
    %16 = vector.broadcast %cst_11 : bf16 to vector<112x64xbf16>
    %17 = arith.maximumf %15, %16 : vector<112x64xbf16>
    %c0_12 = arith.constant 0 : index
    %c0_13 = arith.constant 0 : index
    %18 = vector.load %arg6[%c0_12, %c0_13] : memref<64x128xbf16, #tpu.memory_space<vmem>>, vector<64x128xbf16>
    %cst_14 = arith.constant dense<0.000000e+00> : vector<112x128xf32>
    %19 = tpu.matmul %17, %18, %cst_14 {dimension_numbers = #tpu.dot_dimension_numbers<[1], [0], [0], [1], [0, 0, 1, 1], [], []>} : vector<112x64xbf16>, vector<64x128xbf16>, vector<112x128xf32> -> vector<112x128xf32>
    %c0_15 = arith.constant 0 : index
    %c0_16 = arith.constant 0 : index
    %20 = vector.load %arg7[%c0_15, %c0_16] : memref<1x128xf32, #tpu.memory_space<vmem>>, vector<1x128xf32>
    %21 = vector.broadcast %20 : vector<1x128xf32> to vector<112x128xf32>
    %22 = arith.addf %19, %21 : vector<112x128xf32>
    %cst_17 = arith.constant dense<0xFF800000> : vector<112xf32>
    %23 = vector.multi_reduction <maximumf>, %22, %cst_17 [1] : vector<112x128xf32> to vector<112xf32>
    %24 = vector.shape_cast %23 : vector<112xf32> to vector<112x1xf32>
    %25 = vector.broadcast %24 : vector<112x1xf32> to vector<112x128xf32>
    %26 = arith.subf %22, %25 : vector<112x128xf32>
    %27 = math.exp %26 : vector<112x128xf32>
    %cst_18 = arith.constant dense<0.000000e+00> : vector<112xf32>
    %28 = vector.multi_reduction <add>, %27, %cst_18 [1] : vector<112x128xf32> to vector<112xf32>
    %29 = vector.shape_cast %28 : vector<112xf32> to vector<112x1xf32>
    %30 = math.log %29 : vector<112x1xf32>
    %31 = vector.broadcast %30 : vector<112x1xf32> to vector<112x128xf32>
    %32 = arith.subf %26, %31 : vector<112x128xf32>
    %33 = arith.truncf %32 : vector<112x128xf32> to vector<112x128xbf16>
    %c0_19 = arith.constant 0 : index
    %c0_20 = arith.constant 0 : index
    %34 = vector.load %arg8[%c0_19, %c0_20] : memref<112x128xbf16, #tpu.memory_space<vmem>>, vector<112x128xbf16>
    tpu.vector_store %arg8[%c0_19, %c0_20], %33 {strides = array<i32>} : memref<112x128xbf16, #tpu.memory_space<vmem>>, vector<112x128xbf16>,
    return
  }
  func.func @transform_0(%arg0: i32) -> (i32, i32) {
    %c0_i32 = arith.constant 0 : i32
    %c0_i32_0 = arith.constant 0 : i32
    return %arg0, %c0_i32 : i32, i32
  }
  func.func @transform_1(%arg0: i32) -> (i32, i32) {
    %c0_i32 = arith.constant 0 : i32
    %c0_i32_0 = arith.constant 0 : i32
    %c0_i32_1 = arith.constant 0 : i32
    return %c0_i32, %c0_i32_0 : i32, i32
  }
  func.func @transform_2(%arg0: i32) -> (i32, i32) {
    %c0_i32 = arith.constant 0 : i32
    %c0_i32_0 = arith.constant 0 : i32
    %c0_i32_1 = arith.constant 0 : i32
    return %c0_i32, %c0_i32_0 : i32, i32
  }
  func.func @transform_3(%arg0: i32) -> (i32, i32) {
    %c0_i32 = arith.constant 0 : i32
    %c0_i32_0 = arith.constant 0 : i32
    %c0_i32_1 = arith.constant 0 : i32
    return %c0_i32, %c0_i32_0 : i32, i32
  }
  func.func @transform_4(%arg0: i32) -> (i32, i32) {
    %c0_i32 = arith.constant 0 : i32
    %c0_i32_0 = arith.constant 0 : i32
    %c0_i32_1 = arith.constant 0 : i32
    return %c0_i32, %c0_i32_0 : i32, i32
  }
  func.func @transform_5(%arg0: i32) -> (i32, i32) {
    %c0_i32 = arith.constant 0 : i32
    %c0_i32_0 = arith.constant 0 : i32
    %c0_i32_1 = arith.constant 0 : i32
    return %c0_i32, %c0_i32_0 : i32, i32
  }
  func.func @transform_6(%arg0: i32) -> (i32, i32) {
    %c0_i32 = arith.constant 0 : i32
    %c0_i32_0 = arith.constant 0 : i32
    %c0_i32_1 = arith.constant 0 : i32
    return %c0_i32, %c0_i32_0 : i32, i32
  }
  func.func @transform_7(%arg0: i32) -> (i32, i32) {
    %c0_i32 = arith.constant 0 : i32
    %c0_i32_0 = arith.constant 0 : i32
    return %arg0, %c0_i32 : i32, i32
  }
}

</mosaic_0001>

<bundles_post_ra>
// kernel: tpu_custom_call.1
= control target key start
LH: loop header
LB: loop body
LE: loop exit
PB: predicated region body
PF: predicated region fallthrough
CT: control target
= control target key end

     0   :  { %12 = vsyncpa [#allocation3], 0  ;;  %s1967_s0 = inlined_call_operand.vmem [shape: f32[200,32], index: 0, kind: input, shape index: {}]   ;;  %s1968_s1 = inlined_call_operand.vmem [shape: bf16[32,128], index: 1, kind: input, shape index: {}]   ;;  %s1969_s2 = inlined_call_operand.vmem [shape: bf16[1,128], index: 2, kind: input, shape index: {}]   ;;  %s1970_s3 = inlined_call_operand.vmem [shape: bf16[128,64], index: 3, kind: input, shape index: {}]   ;;  %s1971_s4 = inlined_call_operand.vmem [shape: bf16[1,64], index: 4, kind: input, shape index: {}]   ;;  %s1972_s5 = inlined_call_operand.vmem [shape: bf16[64,128], index: 5, kind: input, shape index: {}]   ;;  %s1973_s6 = inlined_call_operand.vmem [shape: f32[1,128], index: 6, kind: input, shape index: {}]   ;;  %s1974_s7 = inlined_call_operand.hbm [shape: bf16[200,128], index: 7, kind: output, shape index: {}]  }
   0x1   :  { %14 = vsyncpa [#allocation3 + $0x1], 0  ;;  %s1592_s24 = smov 0   ;;  %s1594_s25 = smov 0  }
   0x2   :  { %s1596_s26 = smov 0   ;;  %s1598_s27 = smov 0  }
   0x3 LB: > { %s1613_s28 = sadd.s32 4294967295, %s1544_s27   ;;  %s1106_s29 = sadd.s32 4294967294, %s1544_s27   ;;  %s1544_s27 = sphi %s1598_s27, %s1980_s27   ;;  %s1540_s26 = sphi %s1596_s26, %s1979_s26   ;;  %s1536_s25 = sphi %s1594_s25, %s1978_s25   ;;  %s1532_s24 = sphi %s1592_s24, %s1977_s24  }
   0x4   : > { %s1617_s30 = sadd.s32 1, %s1544_s27   ;;  %s179_s8 = sadd.s32 1, %s1540_s26 }
   0x5   : > { %s176_s9 = ssub.s32 %s1544_s27, %s1617_s30  ;;  %p189_p0 = scmp.ne.s32.totalorder %s1540_s26, %s1536_s25 }
   0x6   : > { %p177_p1 = scmp.eq.s32.totalorder %s176_s9, 0  ;;  %p190_p2 = scmp.eq.s32.totalorder %s1613_s28, 1 }
   0x7   : > { %p195_p3 = scmp.ne.s32.totalorder %s1536_s25, %s1532_s24  ;;  %p196_p4 = scmp.eq.s32.totalorder %s1106_s29, 1 }
   0x8   : > { %s1628_s10 = scalar_select %p177_p1, %s1540_s26, %s179_s8  }
   0x9   : > { %p1630_p5 = por %p190_p2, %p189_p0  ;;  %p1634_p6 = por %p196_p4, %p195_p3 }
   0xa   : > { %p1109_p7 = scmp.ge.s32.totalorder %s1544_s27, 1  ;;  %p249_p8 = scmp.lt.s32.totalorder %s1544_s27, 3 }
   0xc   : > { %p250_p9 = pnand %p1109_p7, %p249_p8 }
   0xd   : > { %v1412_v0 = vld [vmem:[%s1968_s1] sm:$0xff] (!%p250_p9)   ;;  %v1546_v1 = vmov (!%p250_p9), 0.0   ;;  %v1413_v2 = vld [vmem:[%s1968_s1 + $0x8] sm:$0xff] (!%p250_p9)   ;;  %vm1547_vm0 = vmmov (!%p250_p9), 0   ;;  %s1651_s17 = smul.u32 (!%p250_p9), 14, %s1613_s28  ;;  %vm342_vm1 = vcmask (!%p250_p9), 261120   ;;  %v464_v35 = vlaneseq (!%p250_p9) }
   0xe   : > { %253 = sbr.rel (%p250_p9) target bundleno = 1077 (0x435), region = 48  ;;  %1252 = vmatprep.subr.bf16.mxu0 (!%p250_p9), %v1546_v1  ;;  %1364 = vmatprep.subr.bf16.mxu1 (!%p250_p9), %v1546_v1  ;;  %v1414_v8 = vld [vmem:[%s1970_s3] sm:$0xff] (!%p250_p9)   ;;  %v1415_v14 = vld [vmem:[%s1970_s3 + $0x8] sm:$0xff] (!%p250_p9)   ;;  %v1416_v17 = vld [vmem:[%s1970_s3 + $0x10] sm:$0xff] (!%p250_p9)   ;;  %v1548_v52 = vmov (!%p250_p9), 0   ;;  %vm703_vm2 = vcmask (!%p250_p9), 523264  }
   0xf   : > { %1253 = vmatpush3.bf16.msra.mxu0 (!%p250_p9), %v1412_v0  ;;  %1256 = vmatprep.mubr.msk.bf16.mxu0 (!%p250_p9), %vm1547_vm0, %v1546_v1  ;;  %p290_p10 = scmp.lt.s32.totalorder (!%p250_p9), %s1651_s17, 24  ;;  %v1417_v22 = vld [vmem:[%s1970_s3 + $0x18] sm:$0xff] (!%p250_p9)   ;;  %v1418_v25 = vld [vmem:[%s1970_s3 + $0x20] sm:$0xff] (!%p250_p9)   ;;  %v1419_v28 = vld [vmem:[%s1970_s3 + $0x28] sm:$0xff] (!%p250_p9)   ;;  %v1744_v36 = vshrl.u32 (!%p250_p9), %v464_v35, 7  ;;  %s282_s13 = sand.u32 (!%p250_p9), 1, %s1536_s25  }
  0x10   : > { %1254 = vmatprep.subr.bf16.mxu0 (!%p250_p9), %v1546_v1  ;;  %1366 = vmatpush3.bf16.msra.mxu1 (!%p250_p9), %v1412_v0  ;;  %v1420_v30 = vld [vmem:[%s1970_s3 + $0x30] sm:$0xff] (!%p250_p9)   ;;  %v1421_v31 = vld [vmem:[%s1970_s3 + $0x38] sm:$0xff] (!%p250_p9)   ;;  %v1422_v32 = vld [vmem:[%s1972_s5] sm:$0xff] (!%p250_p9)   ;;  %s1368_s14 = smul.u32 (!%p250_p9), 56, %s282_s13  ;;  %s1906_s16 = scalar_lea.sflag (!%p250_p9), [#allocation3], %s282_s13 }
  0x11   : > { %1365 = vmatprep.subr.bf16.mxu1 (!%p250_p9), %v1546_v1  ;;  %1268 = vmatprep.mubr.msk.bf16.mxu1 (!%p250_p9), %vm1547_vm0, %v1546_v1  ;;  %v1423_v33 = vld [vmem:[%s1972_s5 + $0x8] sm:$0xff] (!%p250_p9)   ;;  %v1424_v34 = vld [vmem:[%s1972_s5 + $0x10] sm:$0xff] (!%p250_p9)   ;;  %v460_v37 = vld [vmem:[%s1969_s2] sm:$0x1] (!%p250_p9)  ;;  %v466_v39 = vsub.s32 (!%p250_p9), 0, %v1744_v36 }
  0x12   : > { %v462_v38 = vpack.i.b16 (!%p250_p9), %v460_v37, %v460_v37  ;;  %s1883_s15 = scalar_lea.vmem (!%p250_p9), [#allocation2], %s1368_s14 }
  0x13   : > { %1255 = vmatpush3.bf16.msra.mxu0 (!%p250_p9), %v1413_v2 }
  0x14   : > { %1367 = vmatpush3.bf16.msra.mxu1 (!%p250_p9), %v1413_v2  ;;  %1328 = vmatprep.subr.bf16.mxu0 (!%p250_p9), %v1546_v1  ;;  %v467_v42 = vrot.slane (!%p250_p9), %v462_v38, %v466_v39 }
  0x15   : > { %s291_s18 = scalar_select %p290_p10, %s1651_s17, 24  ;;  %1284 = vmatprep.subr.bf16.mxu1 %v1546_v1 }
  0x17   : > { %s1110_s19 = sshll.u32 %s291_s18, 3  ;;  %s1033_s18 = ssub.s32 (%p1630_p5), 25, %s1651_s17 }
  0x18   : > { %s1664_s22 = scalar_lea.vmem %s1967_s0, %s1110_s19  ;;  %p1034_p11 = scmp.lt.s32.totalorder (%p1630_p5), %s1033_s18, 14 }
  0x19   : > { %v305_v3 = vld [vmem:[%s1664_s22] sm:$0xff]  ;;  %v306_v4 = vld [vmem:[%s1664_s22 + $0x8] sm:$0xff]  ;;  %v311_v6 = vld [vmem:[%s1664_s22 + $0x30] sm:$0xff] }
  0x1a   : > { %v319_v5 = vpack.c.bf16 %v306_v4, %v305_v3  ;;  %v312_v7 = vld [vmem:[%s1664_s22 + $0x38] sm:$0xff]  ;;  %v307_v9 = vld [vmem:[%s1664_s22 + $0x10] sm:$0xff]  ;;  %v313_v12 = vld [vmem:[%s1664_s22 + $0x40] sm:$0xff] }
  0x1b   : > { %v308_v10 = vld [vmem:[%s1664_s22 + $0x18] sm:$0xff]  ;;  %v322_v11 = vpack.c.bf16 %v312_v7, %v311_v6  ;;  %v314_v13 = vld [vmem:[%s1664_s22 + $0x48] sm:$0xff]  ;;  %v309_v18 = vld [vmem:[%s1664_s22 + $0x20] sm:$0xff] }
  0x1c   : > { %1257 = vmatmul.mubr.msk.bf16.vlgmr.msra.gmra.mrb[0].mxu0 %vm342_vm1, %v319_v5  ;;  %v320_v15 = vpack.c.bf16 %v308_v10, %v307_v9  ;;  %v323_v16 = vpack.c.bf16 %v314_v13, %v313_v12  ;;  %v310_v19 = vld [vmem:[%s1664_s22 + $0x28] sm:$0xff]  ;;  %v315_v20 = vld [vmem:[%s1664_s22 + $0x50] sm:$0xff]  ;;  %v316_v21 = vld [vmem:[%s1664_s22 + $0x58] sm:$0xff] }
  0x1d   : > { %1260 = vmatprep.mubr.msk.bf16.mxu0 %vm1547_vm0, %v1546_v1  ;;  %1269 = vmatmul.mubr.msk.bf16.vlgmr.msra.gmra.mrb[0].mxu1 %vm342_vm1, %v322_v11  ;;  %v321_v23 = vpack.c.bf16 %v310_v19, %v309_v18  ;;  %v324_v24 = vpack.c.bf16 %v316_v21, %v315_v20  ;;  %v317_v26 = vld [vmem:[%s1664_s22 + $0x60] sm:$0xff]  ;;  %v318_v27 = vld [vmem:[%s1664_s22 + $0x68] sm:$0xff] }
  0x1e   : > { %1272 = vmatprep.mubr.msk.bf16.mxu1 %vm1547_vm0, %v1546_v1  ;;  %1285 = vmatpush3.bf16.msra.mxu1 %v1414_v8  ;;  %v325_v29 = vpack.c.bf16 %v318_v27, %v317_v26 }
  0x1f   : > { %1286 = vmatprep.subr.bf16.mxu1 %v1546_v1  ;;  %1329 = vmatpush3.bf16.msra.mxu0 %v1422_v32 }
  0x20   : > { %1330 = vmatprep.subr.bf16.mxu0 %v1546_v1 }
  0x22   : > { %1287 = vmatpush3.bf16.msra.mxu1 %v1415_v14 }
  0x23   : > { %1288 = vmatprep.subr.bf16.mxu1 %v1546_v1  ;;  %1331 = vmatpush3.bf16.msra.mxu0 %v1423_v33 }
  0x24   : > { %1261 = vmatmul.mubr.msk.bf16.gmra.mrb[4].mxu0 %vm342_vm1, %v320_v15  ;;  %1332 = vmatprep.subr.bf16.mxu0 %v1546_v1 }
  0x25   : > { %1264 = vmatprep.mubr.msk.bf16.mxu0 %vm1547_vm0, %v1546_v1  ;;  %1273 = vmatmul.mubr.msk.bf16.gmra.mrb[4].mxu1 %vm342_vm1, %v323_v16 }
  0x26   : > { %1276 = vmatprep.mubr.msk.bf16.mxu1 %vm1547_vm0, %v1546_v1  ;;  %1289 = vmatpush3.bf16.msra.mxu1 %v1416_v17 }
  0x27   : > { %1290 = vmatprep.subr.bf16.mxu1 %v1546_v1  ;;  %1333 = vmatpush3.bf16.msra.mxu0 %v1424_v34 }
  0x28   : > { %1334 = vmatprep.subr.bf16.mxu0 %v1546_v1 }
  0x2a   : > { %1291 = vmatpush3.bf16.msra.mxu1 %v1417_v22 }
  0x2b   : > { %1292 = vmatprep.subr.bf16.mxu1 %v1546_v1 }
  0x2c   : > { %1265 = vmatmul.mubr.msk.bf16.gmra.mrb[8].mxu0 %vm342_vm1, %v321_v23 }
  0x2d   : > { %1336 = vmatprep.mubr.msk.bf16.mxu0 %vm1547_vm0, %v1546_v1  ;;  %1277 = vmatmul.mubr.msk.bf16.gmra.mrb[8].mxu1 %vm342_vm1, %v324_v24 }
  0x2e   : > { %1280 = vmatprep.mubr.msk.bf16.mxu1 %vm1547_vm0, %v1546_v1  ;;  %1293 = vmatpush3.bf16.msra.mxu1 %v1418_v25 }
  0x2f   : > { %1294 = vmatprep.subr.bf16.mxu1 %v1546_v1 }
  0x32   : > { %1295 = vmatpush3.bf16.msra.mxu1 %v1419_v28  ;;  %v1425_v28 = vld [vmem:[%s1972_s5 + $0x18] sm:$0xff]  }
  0x33   : > { %1296 = vmatprep.subr.bf16.mxu1 %v1546_v1  ;;  %1335 = vmatpush3.bf16.msra.mxu0 %v1425_v28 }
  0x35   : > { %1281 = vmatmul.mubr.msk.bf16.gmra.mrb[12].mxu1 %vm342_vm1, %v325_v29  ;;  %v642_v29 = vld [vmem:[%s1971_s4] sm:$0x1] }
  0x36   : > { %1300 = vmatprep.mubr.msk.bf16.mxu1 %vm1547_vm0, %v1546_v1  ;;  %1297 = vmatpush3.bf16.msra.mxu1 %v1420_v30  ;;  %v644_v30 = vpack.i.b16 %v642_v29, %v642_v29 }
  0x37   : > { %1298 = vmatprep.subr.bf16.mxu1 %v1546_v1 }
  0x38   : > { %v649_v33 = vrot.slane %v644_v30, %v466_v39 }
  0x3a   : > { %1299 = vmatpush3.bf16.msra.mxu1 %v1421_v31 }
  0xef   : > { %v398_v40 = vpop.f32.mrb[0].mxu0 }
  0xf0   : > { %v1258_v41 = vpop.f32.mrb[1].mxu0  ;;  %v422_v44 = vpop.f32.mrb[0].mxu1 }
  0xf1   : > { %v401_v43 = vpop.f32.mrb[2].mxu0  ;;  %v1270_v47 = vpop.f32.mrb[1].mxu1 }
  0xf2   : > { %v453_v45 = vpack.c.bf16 %v401_v43, %v398_v40  ;;  %v1259_v46 = vpop.f32.mrb[3].mxu0  ;;  %v425_v48 = vpop.f32.mrb[2].mxu1 }
  0xf3   : > { %v456_v50 = vpack.c.bf16 %v425_v48, %v422_v44  ;;  %v1271_v51 = vpop.f32.mrb[3].mxu1 }
  0xf4   : > { %v468_v49 = vadd.bf16 %v467_v42, %v453_v45 }
  0xf5   : > { %v471_v16 = vadd.bf16 %v467_v42, %v456_v50 }
  0xf6   : > { %v475_v53 = vmax.bf16 %v1548_v52, %v468_v49 }
  0xf7   : > { %v406_v54 = vpop.f32.mrb[4].mxu0  ;;  %v478_v21 = vmax.bf16 %v1548_v52, %v471_v16 }
  0xf8   : > { %v1262_v55 = vpop.f32.mrb[5].mxu0  ;;  %1301 = vmatmul.mubr.bf16.vlgmr.msra.gmra.mrb[16].mxu1 %v475_v53  ;;  %v430_v57 = vpop.f32.mrb[4].mxu1 }
  0xf9   : > { %v409_v56 = vpop.f32.mrb[6].mxu0  ;;  %1304 = vmatprep.mubr.msk.bf16.mxu1 %vm1547_vm0, %v1546_v1  ;;  %v1274_v60 = vpop.f32.mrb[5].mxu1 }
  0xfa   : > { %v454_v58 = vpack.c.bf16 %v409_v56, %v406_v54  ;;  %v1263_v59 = vpop.f32.mrb[7].mxu0  ;;  %v433_v61 = vpop.f32.mrb[6].mxu1 }
  0xfb   : > { %v457_v63 = vpack.c.bf16 %v433_v61, %v430_v57  ;;  %v1275_v0 = vpop.f32.mrb[7].mxu1 }
  0xfc   : > { %v469_v62 = vadd.bf16 %v467_v42, %v454_v58 }
  0xfd   : > { %v472_v22 = vadd.bf16 %v467_v42, %v457_v63 }
  0xfe   : > { %v476_v2 = vmax.bf16 %v1548_v52, %v469_v62 }
  0xff   : > { %v414_v3 = vpop.f32.mrb[8].mxu0  ;;  %v479_v23 = vmax.bf16 %v1548_v52, %v472_v22 }
 0x100   : > { %v1266_v4 = vpop.f32.mrb[9].mxu0  ;;  %1305 = vmatmul.mubr.bf16.gmra.mrb[20].mxu1 %v476_v2  ;;  %v438_v6 = vpop.f32.mrb[8].mxu1 }
 0x101   : > { %v417_v5 = vpop.f32.mrb[10].mxu0  ;;  %1308 = vmatprep.mubr.msk.bf16.mxu1 %vm1547_vm0, %v1546_v1  ;;  %v1278_v9 = vpop.f32.mrb[9].mxu1 }
 0x102   : > { %v455_v7 = vpack.c.bf16 %v417_v5, %v414_v3  ;;  %v1267_v8 = vpop.f32.mrb[11].mxu0  ;;  %v441_v10 = vpop.f32.mrb[10].mxu1 }
 0x103   : > { %v458_v12 = vpack.c.bf16 %v441_v10, %v438_v6  ;;  %v1279_v13 = vpop.f32.mrb[11].mxu1 }
 0x104   : > { %v470_v11 = vadd.bf16 %v467_v42, %v455_v7 }
 0x105   : > { %v473_v24 = vadd.bf16 %v467_v42, %v458_v12 }
 0x106   : > { %v477_v14 = vmax.bf16 %v1548_v52, %v470_v11 }
 0x107   : > { %v480_v25 = vmax.bf16 %v1548_v52, %v473_v24 }
 0x108   : > { %1309 = vmatmul.mubr.bf16.gmra.mrb[24].mxu1 %v477_v14  ;;  %v446_v15 = vpop.f32.mrb[12].mxu1 }
 0x109   : > { %1312 = vmatprep.mubr.msk.bf16.mxu1 %vm1547_vm0, %v1546_v1  ;;  %v1282_v17 = vpop.f32.mrb[13].mxu1 }
 0x10a   : > { %v449_v18 = vpop.f32.mrb[14].mxu1 }
 0x10b   : > { %v459_v19 = vpack.c.bf16 %v449_v18, %v446_v15  ;;  %v1283_v20 = vpop.f32.mrb[15].mxu1 }
 0x10d   : > { %v474_v26 = vadd.bf16 %v467_v42, %v459_v19  ;;  %v1128_v19 = vld [vmem:[%s1973_s6] ss:$0 sm:$0xff] }
 0x10f   : > { %v481_v27 = vmax.bf16 %v1548_v52, %v474_v26 }
 0x110   : > { %1313 = vmatmul.mubr.bf16.gmra.mrb[28].mxu1 %v478_v21 }
 0x111   : > { %1316 = vmatprep.mubr.msk.bf16.mxu1 %vm1547_vm0, %v1546_v1 }
 0x118   : > { %1317 = vmatmul.mubr.bf16.gmra.mrb[32].mxu1 %v479_v23 }
 0x119   : > { %1320 = vmatprep.mubr.msk.bf16.mxu1 %vm1547_vm0, %v1546_v1 }
 0x120   : > { %1321 = vmatmul.mubr.bf16.gmra.mrb[36].mxu1 %v480_v25 }
 0x121   : > { %1324 = vmatprep.mubr.msk.bf16.mxu1 %vm1547_vm0, %v1546_v1 }
 0x128   : > { %1325 = vmatmul.mubr.bf16.gmra.mrb[40].mxu1 %v481_v27 }
 0x1cb   : > { %v580_v31 = vpop.f32.mrb[16].mxu1 }
 0x1cc   : > { %v1302_v32 = vpop.f32.mrb[17].mxu1 }
 0x1cd   : > { %v583_v34 = vpop.f32.mrb[18].mxu1 }
 0x1ce   : > { %v635_v35 = vpack.c.bf16 %v583_v34, %v580_v31  ;;  %v1303_v37 = vpop.f32.mrb[19].mxu1 }
 0x1d0   : > { %v650_v38 = vadd.bf16 %v649_v33, %v635_v35 }
 0x1d2   : > { %v657_v40 = vmax.bf16 %v1548_v52, %v650_v38 }
 0x1d3   : > { %v588_v41 = vpop.f32.mrb[20].mxu1 }
 0x1d4   : > { %v1306_v42 = vpop.f32.mrb[21].mxu1  ;;  %1337 = vmatmul.mubr.msk.bf16.vlgmr.msra.gmra.mrb[12].mxu0 %vm703_vm2, %v657_v40 }
 0x1d5   : > { %v591_v43 = vpop.f32.mrb[22].mxu1  ;;  %1340 = vmatprep.mubr.msk.bf16.mxu0 %vm1547_vm0, %v1546_v1 }
 0x1d6   : > { %v636_v44 = vpack.c.bf16 %v591_v43, %v588_v41  ;;  %v1307_v45 = vpop.f32.mrb[23].mxu1 }
 0x1d8   : > { %v651_v46 = vadd.bf16 %v649_v33, %v636_v44 }
 0x1da   : > { %v658_v36 = vmax.bf16 %v1548_v52, %v651_v46 }
 0x1db   : > { %v596_v39 = vpop.f32.mrb[24].mxu1 }
 0x1dc   : > { %v1310_v47 = vpop.f32.mrb[25].mxu1  ;;  %1341 = vmatmul.mubr.msk.bf16.gmra.mrb[16].mxu0 %vm703_vm2, %v658_v36 }
 0x1dd   : > { %v599_v48 = vpop.f32.mrb[26].mxu1  ;;  %1344 = vmatprep.mubr.msk.bf16.mxu0 %vm1547_vm0, %v1546_v1 }
 0x1de   : > { %v637_v49 = vpack.c.bf16 %v599_v48, %v596_v39  ;;  %v1311_v50 = vpop.f32.mrb[27].mxu1 }
 0x1e0   : > { %v652_v51 = vadd.bf16 %v649_v33, %v637_v49 }
 0x1e2   : > { %v659_v53 = vmax.bf16 %v1548_v52, %v652_v51 }
 0x1e3   : > { %v604_v54 = vpop.f32.mrb[28].mxu1 }
 0x1e4   : > { %v1314_v55 = vpop.f32.mrb[29].mxu1  ;;  %1345 = vmatmul.mubr.msk.bf16.gmra.mrb[20].mxu0 %vm703_vm2, %v659_v53 }
 0x1e5   : > { %v607_v56 = vpop.f32.mrb[30].mxu1  ;;  %1348 = vmatprep.mubr.msk.bf16.mxu0 %vm1547_vm0, %v1546_v1 }
 0x1e6   : > { %v638_v57 = vpack.c.bf16 %v607_v56, %v604_v54  ;;  %v1315_v58 = vpop.f32.mrb[31].mxu1 }
 0x1e8   : > { %v653_v59 = vadd.bf16 %v649_v33, %v638_v57 }
 0x1ea   : > { %v660_v60 = vmax.bf16 %v1548_v52, %v653_v59 }
 0x1eb   : > { %v612_v61 = vpop.f32.mrb[32].mxu1 }
 0x1ec   : > { %v1318_v62 = vpop.f32.mrb[33].mxu1  ;;  %1349 = vmatmul.mubr.msk.bf16.gmra.mrb[24].mxu0 %vm703_vm2, %v660_v60 }
 0x1ed   : > { %v615_v63 = vpop.f32.mrb[34].mxu1  ;;  %1352 = vmatprep.mubr.msk.bf16.mxu0 %vm1547_vm0, %v1546_v1 }
 0x1ee   : > { %v639_v0 = vpack.c.bf16 %v615_v63, %v612_v61  ;;  %v1319_v2 = vpop.f32.mrb[35].mxu1 }
 0x1f0   : > { %v654_v3 = vadd.bf16 %v649_v33, %v639_v0 }
 0x1f2   : > { %v661_v4 = vmax.bf16 %v1548_v52, %v654_v3 }
 0x1f3   : > { %v620_v5 = vpop.f32.mrb[36].mxu1 }
 0x1f4   : > { %v1322_v6 = vpop.f32.mrb[37].mxu1  ;;  %1353 = vmatmul.mubr.msk.bf16.gmra.mrb[28].mxu0 %vm703_vm2, %v661_v4 }
 0x1f5   : > { %v623_v7 = vpop.f32.mrb[38].mxu1  ;;  %1356 = vmatprep.mubr.msk.bf16.mxu0 %vm1547_vm0, %v1546_v1 }
 0x1f6   : > { %v640_v8 = vpack.c.bf16 %v623_v7, %v620_v5  ;;  %v1323_v9 = vpop.f32.mrb[39].mxu1 }
 0x1f8   : > { %v655_v10 = vadd.bf16 %v649_v33, %v640_v8 }
 0x1fa   : > { %v662_v11 = vmax.bf16 %v1548_v52, %v655_v10 }
 0x1fb   : > { %v628_v12 = vpop.f32.mrb[40].mxu1 }
 0x1fc   : > { %v1326_v13 = vpop.f32.mrb[41].mxu1  ;;  %1357 = vmatmul.mubr.msk.bf16.gmra.mrb[32].mxu0 %vm703_vm2, %v662_v11 }
 0x1fd   : > { %v631_v14 = vpop.f32.mrb[42].mxu1  ;;  %1360 = vmatprep.mubr.msk.bf16.mxu0 %vm1547_vm0, %v1546_v1 }
 0x1fe   : > { %v641_v15 = vpack.c.bf16 %v631_v14, %v628_v12  ;;  %v1327_v16 = vpop.f32.mrb[43].mxu1 }
 0x200   : > { %v656_v17 = vadd.bf16 %v649_v33, %v641_v15 }
 0x202   : > { %v663_v18 = vmax.bf16 %v1548_v52, %v656_v17 }
 0x204   : > { %1361 = vmatmul.mubr.msk.bf16.gmra.mrb[36].mxu0 %vm703_vm2, %v663_v18 }
 0x2a7   : > { %v759_v20 = vpop.f32.mrb[12].mxu0 }
 0x2a8   : > { %v760_v21 = vadd.f32 %v1128_v19, %v759_v20  ;;  %v1338_v22 = vpop.f32.mrb[13].mxu0 }
 0x2a9   : > { %v762_v23 = vpop.f32.mrb[14].mxu0 }
 0x2aa   : > { %814 = vmax.xlane.f32.xlu0 %v760_v21  ;;  %v1339_v24 = vpop.f32.mrb[15].mxu0  ;;  %v763_v25 = vadd.f32 %v1128_v19, %v762_v23 }
 0x2ae   : > { %816 = vmax.xlane.f32.xlu0 %v763_v25 }
 0x2af   : > { %v767_v1 = vpop.f32.mrb[16].mxu0 }
 0x2b0   : > { %v768_v26 = vadd.f32 %v1128_v19, %v767_v1  ;;  %v1342_v27 = vpop.f32.mrb[17].mxu0 }
 0x2b1   : > { %v770_v28 = vpop.f32.mrb[18].mxu0 }
 0x2b2   : > { %818 = vmax.xlane.f32.xlu1 %v768_v26  ;;  %v1343_v52 = vpop.f32.mrb[19].mxu0  ;;  %v771_v29 = vadd.f32 %v1128_v19, %v770_v28 }
 0x2b6   : > { %820 = vmax.xlane.f32.xlu1 %v771_v29 }
 0x2b7   : > { %v775_v30 = vpop.f32.mrb[20].mxu0 }
 0x2b8   : > { %v776_v31 = vadd.f32 %v1128_v19, %v775_v30  ;;  %v1346_v32 = vpop.f32.mrb[21].mxu0 }
 0x2b9   : > { %v778_v33 = vpop.f32.mrb[22].mxu0 }
 0x2ba   : > { %v779_v34 = vadd.f32 %v1128_v19, %v778_v33  ;;  %822 = vmax.xlane.f32.xlu0 %v776_v31  ;;  %v1347_v35 = vpop.f32.mrb[23].mxu0 }
 0x2bc   : > { %824 = vmax.xlane.f32.xlu1 %v779_v34 }
 0x2bf   : > { %v783_v37 = vpop.f32.mrb[24].mxu0 }
 0x2c0   : > { %v784_v38 = vadd.f32 %v1128_v19, %v783_v37  ;;  %v1350_v40 = vpop.f32.mrb[25].mxu0 }
 0x2c1   : > { %v786_v41 = vpop.f32.mrb[26].mxu0 }
 0x2c2   : > { %v1808_v42 = vadd.f32 %v1128_v19, %v786_v41  ;;  %826 = vmax.xlane.f32.xlu0 %v784_v38  ;;  %v1351_v43 = vpop.f32.mrb[27].mxu0 }
 0x2c4   : > { %828 = vmax.xlane.f32.xlu1 %v1808_v42 }
 0x2c7   : > { %v791_v44 = vpop.f32.mrb[28].mxu0 }
 0x2c8   : > { %v1811_v45 = vadd.f32 %v1128_v19, %v791_v44  ;;  %v1354_v46 = vpop.f32.mrb[29].mxu0 }
 0x2c9   : > { %v794_v36 = vpop.f32.mrb[30].mxu0 }
 0x2ca   : > { %v1813_v39 = vadd.f32 %v1128_v19, %v794_v36  ;;  %830 = vmax.xlane.f32.xlu0 %v1811_v45  ;;  %v1355_v47 = vpop.f32.mrb[31].mxu0 }
 0x2cc   : > { %832 = vmax.xlane.f32.xlu1 %v1813_v39 }
 0x2cf   : > { %v799_v48 = vpop.f32.mrb[32].mxu0 }
 0x2d0   : > { %v1817_v49 = vadd.f32 %v1128_v19, %v799_v48  ;;  %v1358_v50 = vpop.f32.mrb[33].mxu0 }
 0x2d1   : > { %v802_v51 = vpop.f32.mrb[34].mxu0 }
 0x2d2   : > { %v1819_v53 = vadd.f32 %v1128_v19, %v802_v51  ;;  %834 = vmax.xlane.f32.xlu0 %v1817_v49  ;;  %v1359_v54 = vpop.f32.mrb[35].mxu0 }
 0x2d4   : > { %836 = vmax.xlane.f32.xlu1 %v1819_v53 }
 0x2d7   : > { %v807_v55 = vpop.f32.mrb[36].mxu0 }
 0x2d8   : > { %v1823_v56 = vadd.f32 %v1128_v19, %v807_v55  ;;  %v1362_v57 = vpop.f32.mrb[37].mxu0 }
 0x2d9   : > { %v810_v58 = vpop.f32.mrb[38].mxu0 }
 0x2da   : > { %v1825_v59 = vadd.f32 %v1128_v19, %v810_v58  ;;  %838 = vmax.xlane.f32.xlu0 %v1823_v56  ;;  %v1363_v60 = vpop.f32.mrb[39].mxu0 }
 0x2dc   : > { %840 = vmax.xlane.f32.xlu1 %v1825_v59 }
 0x337   : > { %v815_v61 = vpop.xlane.xlu0 %814 }
 0x338   : > { %v1829_v62 = vsub.f32 %v760_v21, %v815_v61 }
 0x33a   : > { %v856_v63 = vmul.f32 1.442695, %v1829_v62 }
 0x33b   : > { %v817_v0 = vpop.xlane.xlu0 %816 }
 0x33c   : > { %1426 = vpow2.f32 %v856_v63  ;;  %v1832_v2 = vsub.f32 %v763_v25, %v817_v0 }
 0x33e   : > { %v858_v3 = vmul.f32 1.442695, %v1832_v2 }
 0x33f   : > { %v819_v4 = vpop.xlane.xlu1 %818 }
 0x340   : > { %1428 = vpow2.f32 %v858_v3  ;;  %v1835_v5 = vsub.f32 %v768_v26, %v819_v4 }
 0x342   : > { %v860_v6 = vmul.f32 1.442695, %v1835_v5 }
 0x343   : > { %v821_v7 = vpop.xlane.xlu1 %820 }
 0x344   : > { %1430 = vpow2.f32 %v860_v6  ;;  %v1838_v8 = vsub.f32 %v771_v29, %v821_v7 }
 0x346   : > { %v1427_v9 = vpop.eup %1426  ;;  %v862_v10 = vmul.f32 1.442695, %v1838_v8 }
 0x347   : > { %v823_v11 = vpop.xlane.xlu0 %822  ;;  %884 = vadd.xlane.f32.xlu0 %v1427_v9 }
 0x348   : > { %1432 = vpow2.f32 %v862_v10  ;;  %v1841_v12 = vsub.f32 %v776_v31, %v823_v11 }
 0x349   : > { %v825_v13 = vpop.xlane.xlu1 %824 }
 0x34a   : > { %v1429_v14 = vpop.eup %1428  ;;  %v864_v15 = vmul.f32 1.442695, %v1841_v12  ;;  %v1844_v16 = vsub.f32 %v779_v34, %v825_v13 }
 0x34b   : > { %886 = vadd.xlane.f32.xlu1 %v1429_v14 }
 0x34c   : > { %1434 = vpow2.f32 %v864_v15  ;;  %v866_v17 = vmul.f32 1.442695, %v1844_v16 }
 0x34e   : > { %v1431_v18 = vpop.eup %1430  ;;  %1436 = vpow2.f32 %v866_v17 }
 0x34f   : > { %v827_v19 = vpop.xlane.xlu0 %826  ;;  %888 = vadd.xlane.f32.xlu0 %v1431_v18 }
 0x350   : > { %v1847_v20 = vsub.f32 %v784_v38, %v827_v19 }
 0x351   : > { %v829_v21 = vpop.xlane.xlu1 %828 }
 0x352   : > { %v1433_v22 = vpop.eup %1432  ;;  %v868_v23 = vmul.f32 1.442695, %v1847_v20  ;;  %v1851_v24 = vsub.f32 %v1808_v42, %v829_v21 }
 0x353   : > { %890 = vadd.xlane.f32.xlu1 %v1433_v22 }
 0x354   : > { %1438 = vpow2.f32 %v868_v23  ;;  %v870_v25 = vmul.f32 1.442695, %v1851_v24 }
 0x356   : > { %v1435_v1 = vpop.eup %1434  ;;  %1440 = vpow2.f32 %v870_v25 }
 0x357   : > { %v831_v26 = vpop.xlane.xlu0 %830  ;;  %892 = vadd.xlane.f32.xlu0 %v1435_v1 }
 0x358   : > { %v1437_v27 = vpop.eup %1436  ;;  %v1855_v28 = vsub.f32 %v1811_v45, %v831_v26 }
 0x359   : > { %v833_v52 = vpop.xlane.xlu1 %832  ;;  %894 = vadd.xlane.f32.xlu1 %v1437_v27 }
 0x35a   : > { %v872_v29 = vmul.f32 1.442695, %v1855_v28  ;;  %v1859_v30 = vsub.f32 %v1813_v39, %v833_v52 }
 0x35c   : > { %1442 = vpow2.f32 %v872_v29  ;;  %v874_v31 = vmul.f32 1.442695, %v1859_v30 }
 0x35e   : > { %v1439_v32 = vpop.eup %1438  ;;  %1444 = vpow2.f32 %v874_v31 }
 0x35f   : > { %v835_v33 = vpop.xlane.xlu0 %834  ;;  %896 = vadd.xlane.f32.xlu0 %v1439_v32 }
 0x360   : > { %v1441_v34 = vpop.eup %1440  ;;  %v1863_v35 = vsub.f32 %v1817_v49, %v835_v33 }
 0x361   : > { %v837_v37 = vpop.xlane.xlu1 %836  ;;  %898 = vadd.xlane.f32.xlu1 %v1441_v34 }
 0x362   : > { %v876_v38 = vmul.f32 1.442695, %v1863_v35  ;;  %v1867_v40 = vsub.f32 %v1819_v53, %v837_v37 }
 0x364   : > { %1446 = vpow2.f32 %v876_v38  ;;  %v878_v41 = vmul.f32 1.442695, %v1867_v40 }
 0x366   : > { %v1443_v42 = vpop.eup %1442  ;;  %1448 = vpow2.f32 %v878_v41 }
 0x367   : > { %900 = vadd.xlane.f32.xlu0 %v1443_v42  ;;  %v839_v43 = vpop.xlane.xlu0 %838 }
 0x368   : > { %v1445_v44 = vpop.eup %1444  ;;  %v1871_v45 = vsub.f32 %v1823_v56, %v839_v43 }
 0x369   : > { %902 = vadd.xlane.f32.xlu1 %v1445_v44  ;;  %v841_v46 = vpop.xlane.xlu1 %840 }
 0x36a   : > { %v880_v36 = vmul.f32 1.442695, %v1871_v45  ;;  %v1876_v39 = vsub.f32 %v1825_v59, %v841_v46 }
 0x36c   : > { %1450 = vpow2.f32 %v880_v36  ;;  %v882_v47 = vmul.f32 1.442695, %v1876_v39 }
 0x36e   : > { %v1447_v48 = vpop.eup %1446  ;;  %1452 = vpow2.f32 %v882_v47 }
 0x36f   : > { %904 = vadd.xlane.f32.xlu0 %v1447_v48 }
 0x370   : > { %v1449_v49 = vpop.eup %1448 }
 0x371   : > { %906 = vadd.xlane.f32.xlu1 %v1449_v49 }
 0x376   : > { %v1451_v50 = vpop.eup %1450 }
 0x377   : > { %908 = vadd.xlane.f32.xlu0 %v1451_v50 }
 0x378   : > { %v1453_v51 = vpop.eup %1452 }
 0x379   : > { %910 = vadd.xlane.f32.xlu1 %v1453_v51 }
 0x3d4   : > { %v885_v53 = vpop.xlane.xlu0 %884 }
 0x3d5   : > { %1454 = vlog2.f32 %v885_v53 }
 0x3d8   : > { %v887_v54 = vpop.xlane.xlu1 %886 }
 0x3d9   : > { %1456 = vlog2.f32 %v887_v54 }
 0x3dc   : > { %v889_v55 = vpop.xlane.xlu0 %888 }
 0x3dd   : > { %1458 = vlog2.f32 %v889_v55 }
 0x3df   : > { %v1455_v56 = vpop.eup %1454 }
 0x3e0   : > { %v891_v57 = vpop.xlane.xlu1 %890  ;;  %v913_v58 = vmul.f32 0.6931472, %v1455_v56 }
 0x3e1   : > { %1460 = vlog2.f32 %v891_v57 }
 0x3e2   : > { %v940_v63 = vsub.f32 %v1829_v62, %v913_v58 }
 0x3e3   : > { %v1457_v59 = vpop.eup %1456 }
 0x3e4   : > { %v915_v60 = vmul.f32 0.6931472, %v1457_v59  ;;  %v893_v61 = vpop.xlane.xlu0 %892 }
 0x3e5   : > { %1462 = vlog2.f32 %v893_v61 }
 0x3e6   : > { %v941_v0 = vsub.f32 %v1832_v2, %v915_v60  ;;  %v895_v3 = vpop.xlane.xlu1 %894 }
 0x3e7   : > { %v1459_v4 = vpop.eup %1458  ;;  %1464 = vlog2.f32 %v895_v3 }
 0x3e8   : > { %v1179_v6 = vpack.c.bf16 %v941_v0, %v940_v63  ;;  %v917_v7 = vmul.f32 0.6931472, %v1459_v4 }
 0x3ea   : > { %1180 = vst [vmem:[%s1883_s15] sm:$0xff] %v1179_v6   ;;  %v942_v13 = vsub.f32 %v1835_v5, %v917_v7 }
 0x3eb   : > { %v1461_v9 = vpop.eup %1460 }
 0x3ec   : > { %v919_v10 = vmul.f32 0.6931472, %v1461_v9  ;;  %v897_v11 = vpop.xlane.xlu0 %896 }
 0x3ed   : > { %1466 = vlog2.f32 %v897_v11 }
 0x3ee   : > { %v943_v62 = vsub.f32 %v1838_v8, %v919_v10  ;;  %v899_v14 = vpop.xlane.xlu1 %898 }
 0x3ef   : > { %v1463_v2 = vpop.eup %1462  ;;  %1468 = vlog2.f32 %v899_v14 }
 0x3f0   : > { %v1184_v15 = vpack.c.bf16 %v943_v62, %v942_v13  ;;  %v921_v17 = vmul.f32 0.6931472, %v1463_v2 }
 0x3f1   : > { %v1465_v18 = vpop.eup %1464 }
 0x3f2   : > { %1211 = vst [vmem:[%s1883_s15 + $0x8] sm:$0xff] %v1184_v15   ;;  %v923_v19 = vmul.f32 0.6931472, %v1465_v18  ;;  %v944_v21 = vsub.f32 %v1841_v12, %v921_v17 }
 0x3f4   : > { %v945_v22 = vsub.f32 %v1844_v16, %v923_v19  ;;  %v901_v23 = vpop.xlane.xlu0 %900 }
 0x3f5   : > { %1470 = vlog2.f32 %v901_v23 }
 0x3f6   : > { %v1189_v25 = vpack.c.bf16 %v945_v22, %v944_v21  ;;  %v903_v5 = vpop.xlane.xlu1 %902 }
 0x3f7   : > { %v1467_v1 = vpop.eup %1466  ;;  %1472 = vlog2.f32 %v903_v5 }
 0x3f8   : > { %1212 = vst [vmem:[%s1883_s15 + $0x10] sm:$0xff] %v1189_v25   ;;  %v925_v8 = vmul.f32 0.6931472, %v1467_v1 }
 0x3f9   : > { %v1469_v26 = vpop.eup %1468 }
 0x3fa   : > { %v927_v27 = vmul.f32 0.6931472, %v1469_v26  ;;  %v946_v52 = vsub.f32 %v1847_v20, %v925_v8 }
 0x3fc   : > { %v947_v29 = vsub.f32 %v1851_v24, %v927_v27  ;;  %v905_v31 = vpop.xlane.xlu0 %904 }
 0x3fd   : > { %1474 = vlog2.f32 %v905_v31 }
 0x3fe   : > { %v1194_v12 = vpack.c.bf16 %v947_v29, %v946_v52  ;;  %v907_v16 = vpop.xlane.xlu1 %906 }
 0x3ff   : > { %v1471_v32 = vpop.eup %1470  ;;  %1476 = vlog2.f32 %v907_v16 }
 0x400   : > { %1213 = vst [vmem:[%s1883_s15 + $0x18] sm:$0xff] %v1194_v12   ;;  %v929_v33 = vmul.f32 0.6931472, %v1471_v32 }
 0x401   : > { %v1473_v34 = vpop.eup %1472 }
 0x402   : > { %v931_v37 = vmul.f32 0.6931472, %v1473_v34  ;;  %v948_v38 = vsub.f32 %v1855_v28, %v929_v33 }
 0x404   : > { %v949_v41 = vsub.f32 %v1859_v30, %v931_v37  ;;  %v909_v42 = vpop.xlane.xlu0 %908 }
 0x405   : > { %1478 = vlog2.f32 %v909_v42 }
 0x406   : > { %v1199_v20 = vpack.c.bf16 %v949_v41, %v948_v38  ;;  %v911_v24 = vpop.xlane.xlu1 %910 }
 0x407   : > { %v1475_v43 = vpop.eup %1474  ;;  %1480 = vlog2.f32 %v911_v24 }
 0x408   : > { %1214 = vst [vmem:[%s1883_s15 + $0x20] sm:$0xff] %v1199_v20   ;;  %v933_v44 = vmul.f32 0.6931472, %v1475_v43 }
 0x409   : > { %v1477_v46 = vpop.eup %1476 }
 0x40a   : > { %v935_v36 = vmul.f32 0.6931472, %v1477_v46  ;;  %v950_v47 = vsub.f32 %v1863_v35, %v933_v44 }
 0x40c   : > { %v951_v48 = vsub.f32 %v1867_v40, %v935_v36 }
 0x40e   : > { %v1204_v28 = vpack.c.bf16 %v951_v48, %v950_v47 }
 0x40f   : > { %v1479_v49 = vpop.eup %1478 }
 0x410   : > { %1215 = vst [vmem:[%s1883_s15 + $0x28] sm:$0xff] %v1204_v28   ;;  %v937_v30 = vmul.f32 0.6931472, %v1479_v49 }
 0x411   : > { %v1481_v50 = vpop.eup %1480 }
 0x412   : > { %v939_v51 = vmul.f32 0.6931472, %v1481_v50  ;;  %v952_v53 = vsub.f32 %v1871_v45, %v937_v30  ;;  %1031 = sbr.rel (!%p1630_p5) target bundleno = 1077 (0x435), region = 52 }
 0x414   : > { %v953_v54 = vsub.f32 %v1876_v39, %v939_v51 }
 0x416   : > { %v1209_v55 = vpack.c.bf16 %v953_v54, %v952_v53 }
 0x418   : > { %1216 = vst [vmem:[%s1883_s15 + $0x30] sm:$0xff] %v1209_v55  }
 0x419   : > { %s1982_s18 = smov (!%p1034_p11, %s1033_s18), 14 }
 0x41a   : > { %s1911_s19 = sshll.u32 %s1982_s18, 6 }
 0x41b   : > { %s1038_s20 = ssub.s32 896, %s1911_s19 }
 0x41c   : > { %1039 = vsyncadd %s1906_s16, %s1038_s20  ;;  %p1155_p12 = scmp.ne.s32.totalorder %s1911_s19, 0  ;;  %s1175_s21 = smul.u32 896, %s1613_s28 }
 0x41d   : > { %s1044_s23 = sshll.u32 %s1883_s15, 4  ;;  %s1549_s8 = smov [#allocation2]   ;;  %s1923_s23 = int_to_ptr.vmem [resolvable:$true] %s1044_s23 }
 0x41e   : > { %s1921_s22 = scalar_lea.hbm %s1974_s7, %s1175_s21  ;;  %s1482_s17 = scalar_lea.vmem %s1923_s23, %s1911_s19 }
 0x41f   : > { %p1483_p13 = scmp.ne.s32.totalorder %s1923_s23, %s1482_s17  ;;  %s1486_s9 = sshll.u32 %s1549_s8, 4  ;;  %s1487_s9 = int_to_ptr.vmem [resolvable:$false] %s1486_s9 }
 0x420   : > { %s1488_s28 = scalar_lea.vmem %s1487_s9, 1792  ;;  %p1489_p2 = scmp.lt.s32.totalorder %s1923_s23, %s1487_s9 }
 0x421   : > { %p1484_p0 = pnand %p1483_p13, %p1155_p12  ;;  %p1490_p3 = scmp.lt.s32.totalorder %s1488_s28, %s1482_s17 }
 0x423   : > { %p1485_p1 = pneg %p1484_p0  ;;  %p1491_p4 = por %p1490_p3, %p1489_p2 }
 0x425   : > { %p1492_p5 = pnand %p1491_p4, %p1485_p1 }
 0x427   : > { %1495 = shalt.err (!%p1492_p5)
}
 0x428   : > { %s1496_s13 = scalar_lea.hbm %s1921_s22, %s1911_s19  ;;  %s1500_s18 = scalar_lea.hbm %s1974_s7, 1600 }
 0x429   : > { %p1497_p7 = scmp.ne.s32.totalorder %s1921_s22, %s1496_s13  ;;  %p1501_p10 = scmp.lt.u32.totalorder %s1921_s22, %s1974_s7 }
 0x42a   : > { %p1502_p11 = scmp.lt.u32.totalorder %s1500_s18, %s1496_s13  ;;  %p1504_p0 = scmp.lt.u32.totalorder %s1496_s13, %s1921_s22 }
 0x42b   : > { %p1498_p8 = pnand %p1497_p7, %p1155_p12 }
 0x42c   : > { %p1503_p13 = por %p1502_p11, %p1501_p10 }
 0x42d   : > { %p1499_p9 = pneg %p1498_p8 }
 0x42e   : > { %p1505_p1 = por %p1504_p0, %p1503_p13 }
 0x430   : > { %p1506_p2 = pnand %p1505_p1, %p1499_p9 }
 0x432   : > { %1509 = shalt.err (!%p1506_p2)
}
 0x433   : > { %s1550_s11 = smov 64   ;;  %s1551_s29 = smov 4  }
 0x434   : > { %1050 = dma.vmem_to_hbm [thread:$0]  (%p1155_p12), %s1923_s23, %s1911_s19, %s1921_s22, %s1906_s16, %s1550_s11, %s1550_s11, %s1551_s29  }
 0x435 PF: > { %p1374_p3 = scmp.ge.s32.totalorder %s1544_s27, 2  ;;  %s1059_s17 = sand.u32 1, %s1532_s24  }
 0x436   : > { %s1060_s8 = scalar_lea.sflag [#allocation3], %s1059_s17 }
 0x437   : > { %p1371_p4 = pnand %p1374_p3, %p1634_p6 }
 0x439   : > { %1527 = dma.done.wait (!%p1371_p4), %s1060_s8, 896  }
 0x43a   : > { %1529 = vsyncadd (!%p1371_p4), %s1060_s8, 4294966400  ;;  %p17_p5 = scmp.ge.s32.totalorder %s1617_s30, 4   ;;  %s1977_s24 = smov %s1536_s25 }
 0x43b   : > { %s1978_s25 = smov %s1540_s26  ;;  %s1979_s26 = smov %s1628_s10 }
 0x43c   : > { %s1980_s27 = smov %s1617_s30  ;;  %19 = sbr.rel (!%p17_p5) target bundleno = 3 (0x3), region = 83 }
 0x443   :  { %1065 = vsyncpa [#allocation3], 1 }
 0x444   :  { %1067 = vsyncpa [#allocation3 + $0x1], 1 }

</bundles_post_ra>
